<compile_context>
chip_gen: v6e
topology: v6e:2x2x1
jax: 0.10.0
libtpu: 0.0.40
codegen_flags: <defaults>
</compile_context>

<pallas_src>
import jax
import jax.numpy as jnp
from jax.experimental import pallas as pl
from jax.experimental.pallas import tpu as pltpu

NUM_ENGINES = 3
NEG_SLOPE = 0.01  # torch.nn.LeakyReLU() default negative_slope


def _leaky_relu(x):
    return jnp.where(x > 0, x, NEG_SLOPE * x)


def _round_up(x, m):
    return ((x + m - 1) // m) * m


# --------------------------------------------------------------------------- #
# Kernel (feature-major: batch on the lane axis)
# --------------------------------------------------------------------------- #
def _fused_engine_kernel(obs_ref, idx_ref, *rest):
    """rest = [w_0, b_0, ..., w_{L-1}, b_{L-1}, sel, red, out_ref].

      obs_ref : bf16 [D, bb]              (batch on the 128-lane axis)
      idx_ref : bf16 [NE, bb]             per-sample engine mixing weights
      w_l     : bf16 [width_l, width_{l-1}]  fused / block-diagonal, transposed
      b_l     : f32  [width_l, 1]
      sel     : bf16 [NE*out, NE]         0/1 selection (broadcast idx to groups)
      red     : bf16 [out, NE*out]        0/1 reduction (sum over engine groups)
      out_ref : f32  [out, bb]
    """
    out_ref = rest[-1]
    sel_ref = rest[-3]
    red_ref = rest[-2]
    layer_refs = rest[:-3]
    n_layers = len(layer_refs) // 2

    x = obs_ref[...]                                        # bf16 [D, bb]
    for l in range(n_layers):
        w_ref = layer_refs[2 * l]
        b_ref = layer_refs[2 * l + 1]
        x = jnp.dot(w_ref[...], x.astype(jnp.bfloat16),
                    preferred_element_type=jnp.float32) + b_ref[...]
        if l < n_layers - 1:
            x = _leaky_relu(x)                              # f32 on the VPU

    # x: [NE*out_dim, bb] f32 — per-engine actions stacked along sublanes.
    # idx_rep[e*out + j, b] = engine_index[b, e]
    idx_rep = jnp.dot(sel_ref[...], idx_ref[...],
                      preferred_element_type=jnp.float32)
    # weighted sum over the NE engine groups
    out = jnp.dot(red_ref[...], (x * idx_rep).astype(jnp.bfloat16),
                  preferred_element_type=jnp.float32)
    out_ref[...] = out.astype(out_ref.dtype)


# --------------------------------------------------------------------------- #
# Wrapper
# --------------------------------------------------------------------------- #
def fuse_engine_params(params):
    """params: list of NE tuples (w0, b0, ..., wL, bL); w is [in, out], b is [1, out].

    Returns per layer (W_t bf16, b_t f32) in the transposed (feature-major)
    orientation:
      layer 0 : W_t = concat_engines(w_e, axis=out).T   -> [NE*H, D]
      layer>0 : W_t = block_diag(w_e).T                 -> [width_l, width_{l-1}]
      b_t     = concat_engines(b_e, axis=out).T         -> [width_l, 1]
    """
    n_layers = len(params[0]) // 2
    fused = []
    for l in range(n_layers):
        ws = [p[2 * l] for p in params]
        bs = [p[2 * l + 1] for p in params]
        if l == 0:
            w = jnp.concatenate(ws, axis=1)
        else:
            w = jax.scipy.linalg.block_diag(*ws)
        b = jnp.concatenate(bs, axis=1)
        fused.append((w.T.astype(jnp.bfloat16), b.T.astype(jnp.float32)))
    return fused


def engine_network_forward(obs, engine_index, params, *, block_b=None,
                           out_dtype=jnp.float32):
    """params: list of NUM_ENGINES tuples (w0, b0, w1, b1, ..., wL, bL).

    Returns engine_action [B, out_dim] (the tensor fed to DistributionWrapper).
    """
    B, D = obs.shape
    n_engines = len(params)
    assert engine_index.shape == (B, n_engines)
    out_dim = params[0][-2].shape[1]

    fused = fuse_engine_params(params)
    flat = [a for layer in fused for a in layer]

    # 0/1 selection / reduction matrices (exact in bf16), feature-major.
    sel = jnp.repeat(jnp.eye(n_engines, dtype=jnp.bfloat16), out_dim, axis=0)  # [NE*out, NE]
    red = jnp.tile(jnp.eye(out_dim, dtype=jnp.bfloat16), (1, n_engines))       # [out, NE*out]

    # Batch tile: the batch lives on the lane axis -> multiple of 128.
    #  * B <= 4096: a single grid step (no wasted ~0.35us per-step overhead on
    #    the single-TC v5e/v6e; the whole problem is one small tile anyway).
    #  * B  > 4096: ~4K-row tiles with an even step count so v7x's two
    #    TensorCores stay balanced.  Per-step VMEM at 4096 is ~5 MiB.
    if block_b is None:
        cap = 4096
        if B <= cap:
            block_b = _round_up(max(B, 128), 128)
        else:
            n_steps = -(-B // cap)
            if n_steps % 2:
                n_steps += 1
            block_b = _round_up(-(-B // n_steps), 128)
    block_b = max(128, _round_up(block_b, 128))
    b_padded = _round_up(B, block_b)

    # Feature-major, lane-dense inputs (pad the batch, then transpose).
    obs_t = jnp.pad(obs, ((0, b_padded - B), (0, 0))).T.astype(jnp.bfloat16)            # [D, Bp]
    idx_t = jnp.pad(engine_index, ((0, b_padded - B), (0, 0))).T.astype(jnp.bfloat16)   # [NE, Bp]

    in_specs = [
        pl.BlockSpec((D, block_b), lambda i: (0, i)),
        pl.BlockSpec((n_engines, block_b), lambda i: (0, i)),
    ]
    for p in flat + [sel, red]:
        # Full-array blocks; constant index map => resident across grid steps.
        in_specs.append(pl.BlockSpec(p.shape, lambda i: (0, 0)))

    out_t = pl.pallas_call(
        _fused_engine_kernel,
        out_shape=jax.ShapeDtypeStruct((out_dim, b_padded), out_dtype),
        grid_spec=pltpu.PrefetchScalarGridSpec(
            num_scalar_prefetch=0,
            grid=(b_padded // block_b,),
            in_specs=in_specs,
            out_specs=pl.BlockSpec((out_dim, block_b), lambda i: (0, i)),
        ),
        compiler_params=pltpu.CompilerParams(
            dimension_semantics=("parallel",)),
    )(obs_t, idx_t, *flat, sel, red)

    return out_t[:, :B].T                                   # [B, out_dim]


# --------------------------------------------------------------------------- #
# Deterministic init + pure-JAX reference
# --------------------------------------------------------------------------- #
def make_mlp_params(key, input_dim, output_dim, hidden_features, hidden_layers):
    """MLP: Linear(in,h), act, [Linear(h,h), act]*(L-1), Linear(h,out)."""
    dims = [input_dim] + [hidden_features] * hidden_layers + [output_dim]
    params = []
    for fan_in, fan_out in zip(dims[:-1], dims[1:]):
        key, kw, kb = jax.random.split(key, 3)
        scale = 1.0 / jnp.sqrt(fan_in)
        w = jax.random.uniform(kw, (fan_in, fan_out), jnp.float32, -scale, scale)
        b = jax.random.uniform(kb, (1, fan_out), jnp.float32, -scale, scale)
        params += [w, b]
    return key, tuple(params)


def reference_forward(obs, engine_index, params):
    """Pure-JAX f32 reference of the PyTorch forward (pre-DistributionWrapper)."""
    actions = []
    for mlp in params:
        n_layers = len(mlp) // 2
        h = obs
        for l in range(n_layers):
            w, b = mlp[2 * l], mlp[2 * l + 1]
            h = h @ w + b
            if l < n_layers - 1:
                h = _leaky_relu(h)
        actions.append(h)
    stacked = jnp.stack(actions, axis=-1)                 # [B, out_dim, NE]
    idx = engine_index[:, None, :]                        # unsqueeze(dim=-2)
    return jnp.sum(stacked * idx, axis=-1)                # [B, out_dim]


if __name__ == "__main__":
    # Small shapes consistent with the module's forward.
    B = 256
    INPUT_DIM = 16
    OUTPUT_DIM = 8
    HIDDEN_FEATURES = 32
    HIDDEN_LAYERS = 2

    key = jax.random.PRNGKey(0)

    params = []
    for _ in range(NUM_ENGINES):
        key, mlp_p = make_mlp_params(key, INPUT_DIM, OUTPUT_DIM,
                                     HIDDEN_FEATURES, HIDDEN_LAYERS)
        params.append(mlp_p)

    key, k_obs, k_idx = jax.random.split(key, 3)
    obs = jax.random.normal(k_obs, (B, INPUT_DIM), jnp.float32)
    # engine_index: per-sample mixing weights over the 3 engines.
    engine_index = jax.nn.softmax(
        jax.random.normal(k_idx, (B, NUM_ENGINES), jnp.float32), axis=-1)

    out = engine_network_forward(obs, engine_index, params)
    out = jax.block_until_ready(out)

    ref = reference_forward(obs, engine_index, params)
    assert out.shape == (B, OUTPUT_DIM), out.shape
    max_err = float(jnp.max(jnp.abs(out - ref)))
    # bf16 matmul operands -> looser tolerance vs the f32 reference.
    assert max_err < 5e-2, f"max abs err {max_err}"

    print("KERNEL_OK")
</pallas_src>

<mosaic_0001>
module attributes {stable_mosaic.version = 11 : i64} {
  func.func @_fused_engine_kernel(%arg0: i32, %arg1: memref<16x256xbf16, #tpu.memory_space<vmem>>, %arg2: memref<3x256xbf16, #tpu.memory_space<vmem>>, %arg3: memref<96x16xbf16, #tpu.memory_space<vmem>>, %arg4: memref<96x1xf32, #tpu.memory_space<vmem>>, %arg5: memref<96x96xbf16, #tpu.memory_space<vmem>>, %arg6: memref<96x1xf32, #tpu.memory_space<vmem>>, %arg7: memref<24x96xbf16, #tpu.memory_space<vmem>>, %arg8: memref<24x1xf32, #tpu.memory_space<vmem>>, %arg9: memref<24x3xbf16, #tpu.memory_space<vmem>>, %arg10: memref<8x24xbf16, #tpu.memory_space<vmem>>, %arg11: memref<8x256xf32, #tpu.memory_space<vmem>>) attributes {dimension_semantics = [#tpu.dimension_semantics<parallel>], iteration_bounds = array<i64: 1>, scalar_prefetch = 0 : i64, scratch_operands = 0 : i64, tpu.core_type = #tpu.core_type<tc>, window_params = [{transform_indices = @transform_0, window_bounds = array<i64: 16, 256>}, {transform_indices = @transform_1, window_bounds = array<i64: 3, 256>}, {pipeline_mode = #tpu.pipeline_mode<synchronous>, transform_indices = @transform_2, window_bounds = array<i64: 96, 16>}, {pipeline_mode = #tpu.pipeline_mode<synchronous>, transform_indices = @transform_3, window_bounds = array<i64: 96, 1>}, {pipeline_mode = #tpu.pipeline_mode<synchronous>, transform_indices = @transform_4, window_bounds = array<i64: 96, 96>}, {pipeline_mode = #tpu.pipeline_mode<synchronous>, transform_indices = @transform_5, window_bounds = array<i64: 96, 1>}, {pipeline_mode = #tpu.pipeline_mode<synchronous>, transform_indices = @transform_6, window_bounds = array<i64: 24, 96>}, {pipeline_mode = #tpu.pipeline_mode<synchronous>, transform_indices = @transform_7, window_bounds = array<i64: 24, 1>}, {pipeline_mode = #tpu.pipeline_mode<synchronous>, transform_indices = @transform_8, window_bounds = array<i64: 24, 3>}, {pipeline_mode = #tpu.pipeline_mode<synchronous>, transform_indices = @transform_9, window_bounds = array<i64: 8, 24>}, {transform_indices = @transform_10, window_bounds = array<i64: 8, 256>}]} {
    %c0 = arith.constant 0 : index
    %c0_0 = arith.constant 0 : index
    %0 = vector.load %arg1[%c0, %c0_0] : memref<16x256xbf16, #tpu.memory_space<vmem>>, vector<16x256xbf16>
    %c0_1 = arith.constant 0 : index
    %c0_2 = arith.constant 0 : index
    %1 = vector.load %arg3[%c0_1, %c0_2] : memref<96x16xbf16, #tpu.memory_space<vmem>>, vector<96x16xbf16>
    %cst = arith.constant dense<0.000000e+00> : vector<96x256xf32>
    %2 = tpu.matmul %1, %0, %cst {dimension_numbers = #tpu.dot_dimension_numbers<[1], [0], [0], [1], [0, 0, 1, 1], [], []>} : vector<96x16xbf16>, vector<16x256xbf16>, vector<96x256xf32> -> vector<96x256xf32>
    %c0_3 = arith.constant 0 : index
    %c0_4 = arith.constant 0 : index
    %3 = vector.load %arg4[%c0_3, %c0_4] : memref<96x1xf32, #tpu.memory_space<vmem>>, vector<96x1xf32>
    %4 = vector.broadcast %3 : vector<96x1xf32> to vector<96x256xf32>
    %5 = arith.addf %2, %4 : vector<96x256xf32>
    %cst_5 = arith.constant 0.000000e+00 : f32
    %6 = vector.broadcast %cst_5 : f32 to vector<96x256xf32>
    %7 = arith.cmpf ogt, %5, %6 : vector<96x256xf32>
    %cst_6 = arith.constant 0.00999999977 : f32
    %8 = vector.broadcast %cst_6 : f32 to vector<96x256xf32>
    %9 = arith.mulf %8, %5 : vector<96x256xf32>
    %10 = arith.select %7, %5, %9 : vector<96x256xi1>, vector<96x256xf32>
    %c0_7 = arith.constant 0 : index
    %c0_8 = arith.constant 0 : index
    %11 = vector.load %arg5[%c0_7, %c0_8] : memref<96x96xbf16, #tpu.memory_space<vmem>>, vector<96x96xbf16>
    %12 = arith.truncf %10 : vector<96x256xf32> to vector<96x256xbf16>
    %cst_9 = arith.constant dense<0.000000e+00> : vector<96x256xf32>
    %13 = tpu.matmul %11, %12, %cst_9 {dimension_numbers = #tpu.dot_dimension_numbers<[1], [0], [0], [1], [0, 0, 1, 1], [], []>} : vector<96x96xbf16>, vector<96x256xbf16>, vector<96x256xf32> -> vector<96x256xf32>
    %c0_10 = arith.constant 0 : index
    %c0_11 = arith.constant 0 : index
    %14 = vector.load %arg6[%c0_10, %c0_11] : memref<96x1xf32, #tpu.memory_space<vmem>>, vector<96x1xf32>
    %15 = vector.broadcast %14 : vector<96x1xf32> to vector<96x256xf32>
    %16 = arith.addf %13, %15 : vector<96x256xf32>
    %cst_12 = arith.constant 0.000000e+00 : f32
    %17 = vector.broadcast %cst_12 : f32 to vector<96x256xf32>
    %18 = arith.cmpf ogt, %16, %17 : vector<96x256xf32>
    %cst_13 = arith.constant 0.00999999977 : f32
    %19 = vector.broadcast %cst_13 : f32 to vector<96x256xf32>
    %20 = arith.mulf %19, %16 : vector<96x256xf32>
    %21 = arith.select %18, %16, %20 : vector<96x256xi1>, vector<96x256xf32>
    %c0_14 = arith.constant 0 : index
    %c0_15 = arith.constant 0 : index
    %22 = vector.load %arg7[%c0_14, %c0_15] : memref<24x96xbf16, #tpu.memory_space<vmem>>, vector<24x96xbf16>
    %23 = arith.truncf %21 : vector<96x256xf32> to vector<96x256xbf16>
    %cst_16 = arith.constant dense<0.000000e+00> : vector<24x256xf32>
    %24 = tpu.matmul %22, %23, %cst_16 {dimension_numbers = #tpu.dot_dimension_numbers<[1], [0], [0], [1], [0, 0, 1, 1], [], []>} : vector<24x96xbf16>, vector<96x256xbf16>, vector<24x256xf32> -> vector<24x256xf32>
    %c0_17 = arith.constant 0 : index
    %c0_18 = arith.constant 0 : index
    %25 = vector.load %arg8[%c0_17, %c0_18] : memref<24x1xf32, #tpu.memory_space<vmem>>, vector<24x1xf32>
    %26 = vector.broadcast %25 : vector<24x1xf32> to vector<24x256xf32>
    %27 = arith.addf %24, %26 : vector<24x256xf32>
    %c0_19 = arith.constant 0 : index
    %c0_20 = arith.constant 0 : index
    %28 = vector.load %arg9[%c0_19, %c0_20] : memref<24x3xbf16, #tpu.memory_space<vmem>>, vector<24x3xbf16>
    %c0_21 = arith.constant 0 : index
    %c0_22 = arith.constant 0 : index
    %29 = vector.load %arg2[%c0_21, %c0_22] : memref<3x256xbf16, #tpu.memory_space<vmem>>, vector<3x256xbf16>
    %cst_23 = arith.constant dense<0.000000e+00> : vector<24x256xf32>
    %30 = tpu.matmul %28, %29, %cst_23 {dimension_numbers = #tpu.dot_dimension_numbers<[1], [0], [0], [1], [0, 0, 1, 1], [], []>} : vector<24x3xbf16>, vector<3x256xbf16>, vector<24x256xf32> -> vector<24x256xf32>
    %c0_24 = arith.constant 0 : index
    %c0_25 = arith.constant 0 : index
    %31 = vector.load %arg10[%c0_24, %c0_25] : memref<8x24xbf16, #tpu.memory_space<vmem>>, vector<8x24xbf16>
    %32 = arith.mulf %27, %30 : vector<24x256xf32>
    %33 = arith.truncf %32 : vector<24x256xf32> to vector<24x256xbf16>
    %cst_26 = arith.constant dense<0.000000e+00> : vector<8x256xf32>
    %34 = tpu.matmul %31, %33, %cst_26 {dimension_numbers = #tpu.dot_dimension_numbers<[1], [0], [0], [1], [0, 0, 1, 1], [], []>} : vector<8x24xbf16>, vector<24x256xbf16>, vector<8x256xf32> -> vector<8x256xf32>
    %c0_27 = arith.constant 0 : index
    %c0_28 = arith.constant 0 : index
    %35 = vector.load %arg11[%c0_27, %c0_28] : memref<8x256xf32, #tpu.memory_space<vmem>>, vector<8x256xf32>
    tpu.vector_store %arg11[%c0_27, %c0_28], %34 {strides = array<i32>} : memref<8x256xf32, #tpu.memory_space<vmem>>, vector<8x256xf32>,
    return
  }
  func.func @transform_0(%arg0: i32) -> (i32, i32) {
    %c0_i32 = arith.constant 0 : i32
    %c0_i32_0 = arith.constant 0 : i32
    return %c0_i32, %arg0 : i32, i32
  }
  func.func @transform_1(%arg0: i32) -> (i32, i32) {
    %c0_i32 = arith.constant 0 : i32
    %c0_i32_0 = arith.constant 0 : i32
    return %c0_i32, %arg0 : i32, i32
  }
  func.func @transform_2(%arg0: i32) -> (i32, i32) {
    %c0_i32 = arith.constant 0 : i32
    %c0_i32_0 = arith.constant 0 : i32
    %c0_i32_1 = arith.constant 0 : i32
    return %c0_i32, %c0_i32_0 : i32, i32
  }
  func.func @transform_3(%arg0: i32) -> (i32, i32) {
    %c0_i32 = arith.constant 0 : i32
    %c0_i32_0 = arith.constant 0 : i32
    %c0_i32_1 = arith.constant 0 : i32
    return %c0_i32, %c0_i32_0 : i32, i32
  }
  func.func @transform_4(%arg0: i32) -> (i32, i32) {
    %c0_i32 = arith.constant 0 : i32
    %c0_i32_0 = arith.constant 0 : i32
    %c0_i32_1 = arith.constant 0 : i32
    return %c0_i32, %c0_i32_0 : i32, i32
  }
  func.func @transform_5(%arg0: i32) -> (i32, i32) {
    %c0_i32 = arith.constant 0 : i32
    %c0_i32_0 = arith.constant 0 : i32
    %c0_i32_1 = arith.constant 0 : i32
    return %c0_i32, %c0_i32_0 : i32, i32
  }
  func.func @transform_6(%arg0: i32) -> (i32, i32) {
    %c0_i32 = arith.constant 0 : i32
    %c0_i32_0 = arith.constant 0 : i32
    %c0_i32_1 = arith.constant 0 : i32
    return %c0_i32, %c0_i32_0 : i32, i32
  }
  func.func @transform_7(%arg0: i32) -> (i32, i32) {
    %c0_i32 = arith.constant 0 : i32
    %c0_i32_0 = arith.constant 0 : i32
    %c0_i32_1 = arith.constant 0 : i32
    return %c0_i32, %c0_i32_0 : i32, i32
  }
  func.func @transform_8(%arg0: i32) -> (i32, i32) {
    %c0_i32 = arith.constant 0 : i32
    %c0_i32_0 = arith.constant 0 : i32
    %c0_i32_1 = arith.constant 0 : i32
    return %c0_i32, %c0_i32_0 : i32, i32
  }
  func.func @transform_9(%arg0: i32) -> (i32, i32) {
    %c0_i32 = arith.constant 0 : i32
    %c0_i32_0 = arith.constant 0 : i32
    %c0_i32_1 = arith.constant 0 : i32
    return %c0_i32, %c0_i32_0 : i32, i32
  }
  func.func @transform_10(%arg0: i32) -> (i32, i32) {
    %c0_i32 = arith.constant 0 : i32
    %c0_i32_0 = arith.constant 0 : i32
    return %c0_i32, %arg0 : i32, i32
  }
}

</mosaic_0001>

<bundles_post_ra>
// kernel: tpu_custom_call.1
= control target key start
LH: loop header
LB: loop body
LE: loop exit
PB: predicated region body
PF: predicated region fallthrough
CT: control target
= control target key end

     0   :  { %v1006_v2 = vmov 0   ;;  %vm163_vm0 = vcmask 130048   ;;  %s1415_s0 = inlined_call_operand.vmem [shape: bf16[16,256], index: 0, kind: input, shape index: {}]   ;;  %s1416_s1 = inlined_call_operand.vmem [shape: bf16[3,256], index: 1, kind: input, shape index: {}]   ;;  %s1417_s2 = inlined_call_operand.vmem [shape: bf16[96,16], index: 2, kind: input, shape index: {}]   ;;  %s1418_s3 = inlined_call_operand.vmem [shape: f32[96,1], index: 3, kind: input, shape index: {}]   ;;  %s1419_s4 = inlined_call_operand.vmem [shape: bf16[96,96], index: 4, kind: input, shape index: {}]   ;;  %s1420_s5 = inlined_call_operand.vmem [shape: f32[96,1], index: 5, kind: input, shape index: {}]   ;;  %s1421_s6 = inlined_call_operand.vmem [shape: bf16[24,96], index: 6, kind: input, shape index: {}]   ;;  %s1422_s7 = inlined_call_operand.vmem [shape: f32[24,1], index: 7, kind: input, shape index: {}]   ;;  %s1423_s8 = inlined_call_operand.vmem [shape: bf16[24,3], index: 8, kind: input, shape index: {}]   ;;  %s1424_s9 = inlined_call_operand.vmem [shape: bf16[8,24], index: 9, kind: input, shape index: {}]   ;;  %s1425_s10 = inlined_call_operand.hbm [shape: f32[8,256], index: 10, kind: output, shape index: {}]  }
   0x1   :  { %v965_v0 = vld [vmem:[%s1415_s0 + $0x4] ss:$8 sps:$4 sm:$0xff]   ;;  %v967_v1 = vld [vmem:[%s1415_s0] ss:$8 sps:$4 sm:$0xff]   ;;  %214 = vmatprep.mubr.bf16.mxu0 %v1006_v2  ;;  %963 = vset.pattern.permute.xlu0 %v1006_v2  ;;  %v61_v4 = vld [vmem:[%s1418_s3 + $0x50] sm:$0xff] }
   0x2   :  { %196 = vmatprep.subr.bf16.mxu0 %v965_v0  ;;  %v968_v3 = vld [vmem:[%s1417_s2] sm:$0xff]   ;;  %964 = vset.pattern.permute.xlu1 %v1006_v2  ;;  %v62_v6 = vld [vmem:[%s1418_s3 + $0x58] sm:$0xff]  ;;  %v969_v7 = vld [vmem:[%s1417_s2 + $0x8] sm:$0xff]  }
   0x3   :  { %197 = vmatpush1.bf16.msra.mxu0 %v967_v1  ;;  %524 = vmatprep.mubr.bf16.mxu1 %v1006_v2  ;;  %v59_v5 = vld [vmem:[%s1418_s3 + $0x40] sm:$0xff]  ;;  %v60_v8 = vld [vmem:[%s1418_s3 + $0x48] sm:$0xff]  ;;  %v57_v9 = vld [vmem:[%s1418_s3 + $0x30] sm:$0xff] }
   0x4   :  { %115 = vperm.xlu0 %963, %v61_v4   ;;  %105 = vperm.xlu1 %964, %v59_v5   ;;  %v58_v10 = vld [vmem:[%s1418_s3 + $0x38] sm:$0xff]  ;;  %v55_v11 = vld [vmem:[%s1418_s3 + $0x20] sm:$0xff]  ;;  %v970_v12 = vld [vmem:[%s1417_s2 + $0x10] sm:$0xff]  }
   0x5   :  { %v56_v13 = vld [vmem:[%s1418_s3 + $0x28] sm:$0xff]  ;;  %v53_v14 = vld [vmem:[%s1418_s3 + $0x10] sm:$0xff]  ;;  %v54_v15 = vld [vmem:[%s1418_s3 + $0x18] sm:$0xff] }
   0x6   :  { %931 = vmatmul.mubr.msk.bf16.vlgmr.msra.gmra.mxu0 %vm163_vm0, %v968_v3 }
   0x7   :  { %224 = vmatprep.mubr.bf16.mxu0 %v1006_v2 }
   0x8   :  { %120 = vperm.xlu0 %963, %v62_v6   ;;  %110 = vperm.xlu1 %964, %v60_v8  }
   0xc   :  { %95 = vperm.xlu0 %963, %v57_v9   ;;  %100 = vperm.xlu1 %964, %v58_v10  }
   0xe   :  { %932 = vmatmul.mubr.msk.bf16.gmra.mxu0 %vm163_vm0, %v969_v7 }
   0xf   :  { %234 = vmatprep.mubr.bf16.mxu0 %v1006_v2 }
  0x10   :  { %85 = vperm.xlu0 %963, %v55_v11   ;;  %90 = vperm.xlu1 %964, %v56_v13  }
  0x16   :  { %933 = vmatmul.mubr.msk.bf16.gmra.mxu0 %vm163_vm0, %v970_v12 }
  0x17   :  { %15 = vsyncpa [#allocation3], 0  ;;  %244 = vmatprep.mubr.bf16.mxu0 %v1006_v2  ;;  %75 = vperm.xlu0 %963, %v53_v14   ;;  %v51_v16 = vld [vmem:[%s1418_s3] sm:$0xff]  ;;  %v971_v17 = vld [vmem:[%s1417_s2 + $0x18] sm:$0xff]  }
  0x18   :  { %80 = vperm.xlu1 %964, %v54_v15   ;;  %v52_v18 = vld [vmem:[%s1418_s3 + $0x8] sm:$0xff]  ;;  %v381_v19 = vld [vmem:[%s1420_s5 + $0x50] sm:$0xff]  ;;  %v382_v20 = vld [vmem:[%s1420_s5 + $0x58] sm:$0xff]  ;;  %s1008_s3 = smov [#allocation2]  }
  0x19   :  { %v379_v21 = vld [vmem:[%s1420_s5 + $0x40] sm:$0xff]  ;;  %v380_v23 = vld [vmem:[%s1420_s5 + $0x48] sm:$0xff]  ;;  %v377_v24 = vld [vmem:[%s1420_s5 + $0x30] sm:$0xff]  ;;  %s915_s13 = sshll.u32 %s1008_s3, 4  ;;  %s916_s13 = int_to_ptr.vmem [resolvable:$true] %s915_s13 }
  0x1a   :  { %v972_v22 = vld [vmem:[%s1417_s2 + $0x20] sm:$0xff]   ;;  %v378_v25 = vld [vmem:[%s1420_s5 + $0x38] sm:$0xff]  ;;  %v973_v27 = vld [vmem:[%s1417_s2 + $0x28] sm:$0xff]   ;;  %s984_s14 = scalar_lea.vmem %s916_s13, 256  ;;  %p989_p1 = scmp.lt.s32.totalorder %s916_s13, %s916_s13 }
  0x1b   :  { %65 = vperm.xlu0 %963, %v51_v16   ;;  %v375_v26 = vld [vmem:[%s1420_s5 + $0x20] sm:$0xff]  ;;  %v376_v28 = vld [vmem:[%s1420_s5 + $0x28] sm:$0xff]  ;;  %v373_v29 = vld [vmem:[%s1420_s5 + $0x10] sm:$0xff]  ;;  %p985_p0 = scmp.ne.s32.totalorder %s916_s13, %s984_s14  ;;  %p990_p2 = scmp.lt.s32.totalorder %s984_s14, %s984_s14 }
  0x1c   :  { %70 = vperm.xlu1 %964, %v52_v18   ;;  %v374_v30 = vld [vmem:[%s1420_s5 + $0x18] sm:$0xff]  ;;  %v371_v31 = vld [vmem:[%s1420_s5] sm:$0xff]  ;;  %v372_v32 = vld [vmem:[%s1420_s5 + $0x8] sm:$0xff] }
  0x1d   :  { %v674_v33 = vld [vmem:[%s1422_s7 + $0x10] sm:$0xff]  ;;  %v672_v34 = vld [vmem:[%s1422_s7] sm:$0xff]  ;;  %v673_v35 = vld [vmem:[%s1422_s7 + $0x8] sm:$0xff]  ;;  %p991_p3 = por %p990_p2, %p989_p1 }
  0x1e   :  { %934 = vmatmul.mubr.msk.bf16.gmra.mxu0 %vm163_vm0, %v971_v17 }
  0x1f   :  { %254 = vmatprep.mubr.bf16.mxu0 %v1006_v2  ;;  %435 = vperm.xlu0 %963, %v381_v19   ;;  %p992_p4 = pnand %p991_p3, %p985_p0 }
  0x20   :  { %440 = vperm.xlu1 %964, %v382_v20  }
  0x23   :  { %425 = vperm.xlu0 %963, %v379_v21  }
  0x24   :  { %430 = vperm.xlu1 %964, %v380_v23  }
  0x26   :  { %935 = vmatmul.mubr.msk.bf16.gmra.mxu0 %vm163_vm0, %v972_v22 }
  0x27   :  { %264 = vmatprep.mubr.bf16.mxu0 %v1006_v2  ;;  %415 = vperm.xlu0 %963, %v377_v24  }
  0x28   :  { %420 = vperm.xlu1 %964, %v378_v25  }
  0x2b   :  { %405 = vperm.xlu0 %963, %v375_v26  }
  0x2c   :  { %410 = vperm.xlu1 %964, %v376_v28  }
  0x2e   :  { %936 = vmatmul.mubr.msk.bf16.gmra.mxu0 %vm163_vm0, %v973_v27 }
  0x2f   :  { %736 = vmatprep.mubr.bf16.mxu0 %v1006_v2  ;;  %395 = vperm.xlu0 %963, %v373_v29  }
  0x30   :  { %400 = vperm.xlu1 %964, %v374_v30  }
  0x33   :  { %385 = vperm.xlu0 %963, %v371_v31  }
  0x34   :  { %390 = vperm.xlu1 %964, %v372_v32  }
  0x37   :  { %687 = vperm.xlu0 %963, %v674_v33  }
  0x38   :  { %677 = vperm.xlu1 %964, %v672_v34  }
  0x3b   :  { %682 = vperm.xlu0 %963, %v673_v35  }
  0x7f   :  { %v106_v41 = vpop.permute.xlu1 %105  ;;  %v116_v43 = vpop.permute.xlu0 %115 }
  0x83   :  { %v111_v46 = vpop.permute.xlu1 %110  ;;  %v121_v48 = vpop.permute.xlu0 %120 }
  0x87   :  { %v101_v51 = vpop.permute.xlu1 %100  ;;  %v96_v53 = vpop.permute.xlu0 %95 }
  0x8b   :  { %v91_v56 = vpop.permute.xlu1 %90  ;;  %v1195_v58 = vpop.permute.xlu0 %85 }
  0x92   :  { %v1199_v63 = vpop.permute.xlu0 %75 }
  0x93   :  { %v1197_v61 = vpop.permute.xlu1 %80 }
  0x96   :  { %v1203_v5 = vpop.permute.xlu0 %65 }
  0x97   :  { %v1201_v3 = vpop.permute.xlu1 %70 }
  0xc6   :  { %v1185_v36 = vpop.f32.mrf.mxu0 }
  0xc8   :  { %v218_v37 = vpop.f32.mrf.mxu0 }
  0xc9   :  { %v1206_v6 = vadd.f32 %v218_v37, %v1203_v5 }
  0xca   :  { %v220_v38 = vpop.f32.mrf.mxu0 }
  0xcb   :  { %v1209_v9 = vadd.f32 %v220_v38, %v1201_v3 }
  0xcc   :  { %v1187_v39 = vpop.f32.mrf.mxu0 }
  0xce   :  { %v1189_v40 = vpop.f32.mrf.mxu0 }
  0xd0   :  { %v228_v42 = vpop.f32.mrf.mxu0 }
  0xd1   :  { %v1212_v10 = vadd.f32 %v228_v42, %v1199_v63 }
  0xd2   :  { %v230_v44 = vpop.f32.mrf.mxu0 }
  0xd3   :  { %v1215_v11 = vadd.f32 %v230_v44, %v1197_v61 }
  0xd4   :  { %v1191_v45 = vpop.f32.mrf.mxu0 }
  0xd6   :  { %v1193_v47 = vpop.f32.mrf.mxu0 }
  0xd8   :  { %v238_v49 = vpop.f32.mrf.mxu0 }
  0xd9   :  { %v1218_v13 = vadd.f32 %v238_v49, %v1195_v58 }
  0xda   :  { %v240_v50 = vpop.f32.mrf.mxu0 }
  0xdb   :  { %v1220_v14 = vadd.f32 %v240_v50, %v91_v56  ;;  %vm284_vm14 = vcmp.gt.f32.partialorder %v1218_v13, 0.0 }
  0xdc   :  { %v242_v52 = vpop.f32.mrf.mxu0 }
  0xdd   :  { %v1222_v15 = vadd.f32 %v242_v52, %v91_v56  ;;  %vm285_vm15 = vcmp.gt.f32.partialorder %v1220_v14, 0.0 }
  0xde   :  { %v246_v54 = vpop.f32.mrf.mxu0 }
  0xdf   :  { %v1224_v18 = vadd.f32 %v246_v54, %v96_v53  ;;  %v233_v54 = vadd.f32 %v1191_v45, %v1197_v61  ;;  %vm286_vm12 = vcmp.gt.f32.partialorder %v1222_v15, 0.0 }
  0xe0   :  { %v248_v55 = vpop.f32.mrf.mxu0 }
  0xe1   :  { %v249_v19 = vadd.f32 %v248_v55, %v96_v53  ;;  %v310_v55 = vmul.f32 0.01, %v1222_v15  ;;  %vm287_vm13 = vcmp.gt.f32.partialorder %v1224_v18, 0.0  ;;  %vm282_vm0 = vcmp.gt.f32.partialorder %v233_v54, 0.0 }
  0xe2   :  { %v250_v57 = vpop.f32.mrf.mxu0 }
  0xe3   :  { %v251_v22 = vadd.f32 %v250_v57, %v101_v51  ;;  %vm288_vm10 = vcmp.gt.f32.partialorder %v249_v19, 0.0  ;;  %v237_v57 = vadd.f32 %v1193_v47, %v1195_v58  ;;  %v223_v58 = vadd.f32 %v1187_v39, %v1201_v3 }
  0xe4   :  { %v252_v59 = vpop.f32.mrf.mxu0  ;;  %v304_v39 = vmul.f32 0.01, %v1212_v10 }
  0xe5   :  { %v253_v23 = vadd.f32 %v252_v59, %v101_v51  ;;  %v313_v51 = vmul.f32 0.01, %v251_v22  ;;  %vm289_vm11 = vcmp.gt.f32.partialorder %v251_v22, 0.0  ;;  %v311_v59 = vmul.f32 0.01, %v1224_v18 }
  0xe6   :  { %v256_v60 = vpop.f32.mrf.mxu0 }
  0xe7   :  { %v257_v30 = vadd.f32 %v256_v60, %v106_v41  ;;  %v314_v34 = vmul.f32 0.01, %v253_v23  ;;  %vm290_vm8 = vcmp.gt.f32.partialorder %v253_v23, 0.0  ;;  %v337_v47 = vsel %vm289_vm11, %v251_v22, %v313_v51 }
  0xe8   :  { %v258_v62 = vpop.f32.mrf.mxu0 }
  0xe9   :  { %v259_v20 = vadd.f32 %v258_v62, %v106_v41  ;;  %v315_v44 = vmul.f32 0.01, %v257_v30  ;;  %v312_v41 = vmul.f32 0.01, %v249_v19  ;;  %vm291_vm9 = vcmp.gt.f32.partialorder %v257_v30, 0.0 }
  0xea   :  { %v260_v0 = vpop.f32.mrf.mxu0  ;;  %v338_v56 = vsel %vm290_vm8, %v253_v23, %v314_v34  ;;  %v308_v62 = vmul.f32 0.01, %v1218_v13  ;;  %v978_v34 = vld [vmem:[%s1419_s4 + $0x20] sm:$0xff]  }
  0xeb   :  { %v261_v24 = vadd.f32 %v260_v0, %v111_v46  ;;  %v316_v32 = vmul.f32 0.01, %v259_v20  ;;  %vm292_vm6 = vcmp.gt.f32.partialorder %v259_v20, 0.0  ;;  %v339_v60 = vsel %vm291_vm9, %v257_v30, %v315_v44 }
  0xec   :  { %v262_v1 = vpop.f32.mrf.mxu0  ;;  %v336_v61 = vsel %vm288_vm10, %v249_v19, %v312_v41  ;;  %v309_v0 = vmul.f32 0.01, %v1220_v14  ;;  %v302_v19 = vmul.f32 0.01, %v223_v58  ;;  %vm473_vm9 = vcmask 785408   ;;  %v441_v41 = vpop.permute.xlu1 %440 }
  0xed   :  { %v263_v7 = vadd.f32 %v262_v1, %v111_v46  ;;  %v317_v35 = vmul.f32 0.01, %v261_v24  ;;  %vm293_vm7 = vcmp.gt.f32.partialorder %v261_v24, 0.0  ;;  %v340_v50 = vsel %vm292_vm6, %v259_v20, %v316_v32 }
  0xee   :  { %v266_v4 = vpop.f32.mrf.mxu0  ;;  %v366_v1 = vpack.c.bf16 %v338_v56, %v336_v61  ;;  %v217_v20 = vadd.f32 %v1185_v36, %v1203_v5  ;;  %vm276_vm6 = vcmp.gt.f32.partialorder %v1206_v6, 0.0 }
  0xef   :  { %v267_v16 = vadd.f32 %v266_v4, %v116_v43  ;;  %v318_v25 = vmul.f32 0.01, %v263_v7  ;;  %vm294_vm2 = vcmp.gt.f32.partialorder %v263_v7, 0.0  ;;  %v341_v53 = vsel %vm293_vm7, %v261_v24, %v317_v35  ;;  %v979_v35 = vld [vmem:[%s1419_s4 + $0x28] sm:$0xff]  }
  0xf0   :  { %v268_v8 = vpop.f32.mrf.mxu0  ;;  %v367_v45 = vpack.c.bf16 %v341_v53, %v339_v60  ;;  %v306_v4 = vmul.f32 0.01, %v233_v54  ;;  %v301_v24 = vmul.f32 0.01, %v1209_v9  ;;  %vm277_vm7 = vcmp.gt.f32.partialorder %v1209_v9, 0.0  ;;  %v431_v53 = vpop.permute.xlu1 %430 }
  0xf1   :  { %v269_v12 = vadd.f32 %v268_v8, %v116_v43  ;;  %v319_v31 = vmul.f32 0.01, %v267_v16  ;;  %vm295_vm5 = vcmp.gt.f32.partialorder %v267_v16, 0.0  ;;  %v342_v43 = vsel %vm294_vm2, %v263_v7, %v318_v25 }
  0xf2   :  { %v270_v17 = vpop.f32.mrf.mxu0  ;;  %v368_v52 = vpack.c.bf16 %v342_v43, %v340_v50  ;;  %v334_v7 = vsel %vm286_vm12, %v1222_v15, %v310_v55  ;;  %v227_v8 = vadd.f32 %v1189_v40, %v1199_v63  ;;  %vm280_vm2 = vcmp.gt.f32.partialorder %v1212_v10, 0.0 }
  0xf3   :  { %v271_v21 = vadd.f32 %v270_v17, %v121_v48  ;;  %v320_v27 = vmul.f32 0.01, %v269_v12  ;;  %vm296_vm3 = vcmp.gt.f32.partialorder %v269_v12, 0.0  ;;  %v332_v17 = vsel %vm284_vm14, %v1218_v13, %v308_v62 }
  0xf4   :  { %v272_v26 = vpop.f32.mrf.mxu0  ;;  %v305_v15 = vmul.f32 0.01, %v1215_v11  ;;  %v364_v40 = vpack.c.bf16 %v334_v7, %v332_v17  ;;  %v333_v63 = vsel %vm285_vm15, %v1220_v14, %v309_v0  ;;  %v300_v13 = vmul.f32 0.01, %v1206_v6 }
  0xf5   :  { %v321_v28 = vmul.f32 0.01, %v271_v21  ;;  %v273_v29 = vadd.f32 %v272_v26, %v121_v48  ;;  %vm297_vm1 = vcmp.gt.f32.partialorder %v271_v21, 0.0  ;;  %v344_v38 = vsel %vm296_vm3, %v269_v12, %v320_v27 }
  0xf6   :  { %v343_v48 = vsel %vm295_vm5, %v267_v16, %v319_v31  ;;  %v307_v12 = vmul.f32 0.01, %v237_v57  ;;  %v335_v16 = vsel %vm287_vm13, %v1224_v18, %v311_v59  ;;  %vm281_vm3 = vcmp.gt.f32.partialorder %v1215_v11, 0.0  ;;  %v421_v59 = vpop.permute.xlu1 %420 }
  0xf7   :  { %v322_v33 = vmul.f32 0.01, %v273_v29  ;;  %vm298_vm4 = vcmp.gt.f32.partialorder %v273_v29, 0.0  ;;  %v345_v37 = vsel %vm297_vm1, %v271_v21, %v321_v28  ;;  %vm283_vm1 = vcmp.gt.f32.partialorder %v237_v57, 0.0 }
  0xf8   :  { %v369_v49 = vpack.c.bf16 %v345_v37, %v343_v48  ;;  %v365_v3 = vpack.c.bf16 %v337_v47, %v335_v16  ;;  %v330_v18 = vsel %vm282_vm0, %v233_v54, %v306_v4  ;;  %v303_v21 = vmul.f32 0.01, %v227_v8  ;;  %v436_v48 = vpop.permute.xlu0 %435 }
  0xf9   :  { %v346_v42 = vsel %vm298_vm4, %v273_v29, %v322_v33  ;;  %vm278_vm4 = vcmp.gt.f32.partialorder %v223_v58, 0.0  ;;  %v331_v22 = vsel %vm283_vm1, %v237_v57, %v307_v12  ;;  %vm279_vm5 = vcmp.gt.f32.partialorder %v227_v8, 0.0  ;;  %v977_v33 = vld [vmem:[%s1419_s4 + $0x18] sm:$0xff]  }
  0xfa   :  { %v370_v46 = vpack.c.bf16 %v346_v42, %v344_v38  ;;  %v363_v23 = vpack.c.bf16 %v333_v63, %v331_v22  ;;  %v328_v14 = vsel %vm280_vm2, %v1212_v10, %v304_v39  ;;  %v329_v26 = vsel %vm281_vm3, %v1215_v11, %v305_v15  ;;  %v974_v11 = vld [vmem:[%s1419_s4] sm:$0xff]   ;;  %v411_v0 = vpop.permute.xlu1 %410 }
  0xfb   :  { %v362_v25 = vpack.c.bf16 %v330_v18, %v328_v14  ;;  %v326_v36 = vsel %vm278_vm4, %v223_v58, %v302_v19  ;;  %v299_v5 = vmul.f32 0.01, %v217_v20  ;;  %v327_v27 = vsel %vm279_vm5, %v227_v8, %v303_v21 }
  0xfc   :  { %496 = vmatprep.subr.bf16.mxu1 %v370_v46  ;;  %vm275_vm8 = vcmp.gt.f32.partialorder %v217_v20, 0.0  ;;  %v361_v28 = vpack.c.bf16 %v329_v26, %v327_v27  ;;  %v324_v29 = vsel %vm276_vm6, %v1206_v6, %v300_v13  ;;  %v325_v10 = vsel %vm277_vm7, %v1209_v9, %v301_v24  ;;  %v975_v6 = vld [vmem:[%s1419_s4 + $0x8] sm:$0xff]   ;;  %v976_v9 = vld [vmem:[%s1419_s4 + $0x10] sm:$0xff]  }
  0xfd   :  { %497 = vmatpush1.bf16.msra.mxu1 %v369_v49  ;;  %v360_v30 = vpack.c.bf16 %v326_v36, %v324_v29  ;;  %v323_v31 = vsel %vm275_vm8, %v217_v20, %v299_v5  ;;  %vm783_vm2 = vcmask 1040384  }
  0xfe   :  { %498 = vmatprep.subr.bf16.mxu1 %v368_v52  ;;  %v359_v32 = vpack.c.bf16 %v325_v10, %v323_v31  ;;  %v426_v52 = vpop.permute.xlu0 %425  ;;  %v401_v7 = vpop.permute.xlu1 %400 }
 0x101   :  { %499 = vmatpush1.bf16.msra.mxu1 %v367_v45 }
 0x102   :  { %500 = vmatprep.subr.bf16.mxu1 %v366_v1  ;;  %v416_v57 = vpop.permute.xlu0 %415 }
 0x105   :  { %501 = vmatpush1.bf16.msra.mxu1 %v365_v3  ;;  %v1318_v3 = vpop.permute.xlu1 %390 }
 0x106   :  { %502 = vmatprep.subr.bf16.mxu1 %v364_v40  ;;  %v1312_v61 = vpop.permute.xlu0 %405 }
 0x109   :  { %503 = vmatpush1.bf16.msra.mxu1 %v363_v23 }
 0x10a   :  { %504 = vmatprep.subr.bf16.mxu1 %v362_v25  ;;  %v1314_v4 = vpop.permute.xlu0 %395 }
 0x10d   :  { %505 = vmatpush1.bf16.msra.mxu1 %v361_v28 }
 0x10e   :  { %506 = vmatprep.subr.bf16.mxu1 %v360_v30  ;;  %v1316_v39 = vpop.permute.xlu0 %385 }
 0x111   :  { %507 = vmatpush1.bf16.msra.mxu1 %v359_v32 }
 0x114   :  { %943 = vmatmul.mubr.msk.bf16.vlgmr.msra.gmra.mxu1 %vm473_vm9, %v974_v11 }
 0x115   :  { %534 = vmatprep.mubr.bf16.mxu1 %v1006_v2 }
 0x11c   :  { %944 = vmatmul.mubr.msk.bf16.gmra.mxu1 %vm473_vm9, %v975_v6 }
 0x11d   :  { %544 = vmatprep.mubr.bf16.mxu1 %v1006_v2 }
 0x124   :  { %945 = vmatmul.mubr.msk.bf16.gmra.mxu1 %vm473_vm9, %v976_v9 }
 0x125   :  { %554 = vmatprep.mubr.bf16.mxu1 %v1006_v2 }
 0x12c   :  { %946 = vmatmul.mubr.msk.bf16.gmra.mxu1 %vm473_vm9, %v977_v33 }
 0x12d   :  { %564 = vmatprep.mubr.bf16.mxu1 %v1006_v2 }
 0x134   :  { %947 = vmatmul.mubr.msk.bf16.gmra.mxu1 %vm473_vm9, %v978_v34 }
 0x135   :  { %574 = vmatprep.mubr.bf16.mxu1 %v1006_v2 }
 0x13c   :  { %948 = vmatmul.mubr.msk.bf16.gmra.mxu1 %vm473_vm9, %v979_v35 }
 0x13d   :  { %898 = vmatprep.mubr.bf16.mxu1 %v1006_v2 }
 0x1d4   :  { %v1302_v37 = vpop.f32.mrf.mxu1 }
 0x1d6   :  { %v528_v38 = vpop.f32.mrf.mxu1 }
 0x1d7   :  { %v1321_v17 = vadd.f32 %v528_v38, %v1316_v39 }
 0x1d8   :  { %v530_v42 = vpop.f32.mrf.mxu1 }
 0x1d9   :  { %v1324_v63 = vadd.f32 %v530_v42, %v1318_v3 }
 0x1da   :  { %v1304_v43 = vpop.f32.mrf.mxu1 }
 0x1dc   :  { %v1306_v44 = vpop.f32.mrf.mxu1 }
 0x1de   :  { %v538_v46 = vpop.f32.mrf.mxu1 }
 0x1df   :  { %v1327_v19 = vadd.f32 %v538_v46, %v1314_v4 }
 0x1e0   :  { %v540_v49 = vpop.f32.mrf.mxu1 }
 0x1e1   :  { %v1329_v18 = vadd.f32 %v540_v49, %v401_v7 }
 0x1e2   :  { %v1308_v50 = vpop.f32.mrf.mxu1 }
 0x1e4   :  { %v1310_v51 = vpop.f32.mrf.mxu1 }
 0x1e6   :  { %v548_v54 = vpop.f32.mrf.mxu1 }
 0x1e7   :  { %v1332_v21 = vadd.f32 %v548_v54, %v1312_v61 }
 0x1e8   :  { %v550_v55 = vpop.f32.mrf.mxu1 }
 0x1e9   :  { %v1334_v22 = vadd.f32 %v550_v55, %v411_v0  ;;  %vm594_vm8 = vcmp.gt.f32.partialorder %v1332_v21, 0.0 }
 0x1ea   :  { %v552_v56 = vpop.f32.mrf.mxu1 }
 0x1eb   :  { %v1336_v13 = vadd.f32 %v552_v56, %v411_v0  ;;  %v547_v0 = vadd.f32 %v1310_v51, %v1312_v61  ;;  %v533_v61 = vadd.f32 %v1304_v43, %v1318_v3  ;;  %v614_v43 = vmul.f32 0.01, %v1327_v19 }
 0x1ec   :  { %v556_v60 = vpop.f32.mrf.mxu1 }
 0x1ed   :  { %v1338_v24 = vadd.f32 %v556_v60, %v416_v57  ;;  %v543_v60 = vadd.f32 %v1308_v50, %v401_v7  ;;  %vm596_vm6 = vcmp.gt.f32.partialorder %v1336_v13, 0.0 }
 0x1ee   :  { %v558_v62 = vpop.f32.mrf.mxu1 }
 0x1ef   :  { %v559_v25 = vadd.f32 %v558_v62, %v416_v57  ;;  %v620_v62 = vmul.f32 0.01, %v1336_v13  ;;  %vm597_vm7 = vcmp.gt.f32.partialorder %v1338_v24, 0.0 }
 0x1f0   :  { %v560_v45 = vpop.f32.mrf.mxu1 }
 0x1f1   :  { %v561_v5 = vadd.f32 %v560_v45, %v421_v59  ;;  %vm598_vm4 = vcmp.gt.f32.partialorder %v559_v25, 0.0 }
 0x1f2   :  { %v562_v1 = vpop.f32.mrf.mxu1 }
 0x1f3   :  { %v563_v27 = vadd.f32 %v562_v1, %v421_v59  ;;  %v623_v56 = vmul.f32 0.01, %v561_v5  ;;  %vm599_vm5 = vcmp.gt.f32.partialorder %v561_v5, 0.0  ;;  %v621_v1 = vmul.f32 0.01, %v1338_v24 }
 0x1f4   :  { %v566_v47 = vpop.f32.mrf.mxu1 }
 0x1f5   :  { %v567_v11 = vadd.f32 %v566_v47, %v426_v52  ;;  %v624_v34 = vmul.f32 0.01, %v563_v27  ;;  %vm600_vm1 = vcmp.gt.f32.partialorder %v563_v27, 0.0 }
 0x1f6   :  { %v568_v58 = vpop.f32.mrf.mxu1 }
 0x1f7   :  { %v569_v26 = vadd.f32 %v568_v58, %v426_v52  ;;  %v625_v49 = vmul.f32 0.01, %v567_v11  ;;  %v622_v52 = vmul.f32 0.01, %v559_v25  ;;  %vm601_vm3 = vcmp.gt.f32.partialorder %v567_v11, 0.0 }
 0x1f8   :  { %v570_v8 = vpop.f32.mrf.mxu1  ;;  %v648_v45 = vsel %vm600_vm1, %v563_v27, %v624_v34  ;;  %v618_v58 = vmul.f32 0.01, %v1332_v21 }
 0x1f9   :  { %v571_v28 = vadd.f32 %v570_v8, %v431_v53  ;;  %v626_v9 = vmul.f32 0.01, %v569_v26  ;;  %vm602_vm15 = vcmp.gt.f32.partialorder %v569_v26, 0.0  ;;  %v649_v47 = vsel %vm601_vm3, %v567_v11, %v625_v49  ;;  %v983_v49 = vld [vmem:[%s1423_s8 + $0x8] ss:$0 sps:$4 sm:$0xff]  }
 0x1fa   :  { %v572_v12 = vpop.f32.mrf.mxu1  ;;  %v646_v7 = vsel %vm598_vm4, %v559_v25, %v622_v52  ;;  %v619_v8 = vmul.f32 0.01, %v1334_v22  ;;  %v612_v25 = vmul.f32 0.01, %v533_v61  ;;  %vm586_vm3 = vcmp.gt.f32.partialorder %v1321_v17, 0.0 }
 0x1fb   :  { %v573_v15 = vadd.f32 %v572_v12, %v431_v53  ;;  %v627_v35 = vmul.f32 0.01, %v571_v28  ;;  %vm603_vm0 = vcmp.gt.f32.partialorder %v571_v28, 0.0  ;;  %v650_v55 = vsel %vm602_vm15, %v569_v26, %v626_v9 }
 0x1fc   :  { %v576_v16 = vpop.f32.mrf.mxu1  ;;  %v647_v12 = vsel %vm599_vm5, %v561_v5, %v623_v56  ;;  %v667_v51 = vpack.c.bf16 %v648_v45, %v646_v7  ;;  %vm591_vm15 = vcmp.gt.f32.partialorder %v1329_v18, 0.0  ;;  %v955_v26 = vld.sshfl [vmem:[%s1416_s1] sm:$0x33 pattern:$0x76325410]  ;;  %vm776_vm5 = vcmask 23552  }
 0x1fd   :  { %v577_v23 = vadd.f32 %v576_v16, %v436_v48  ;;  %v628_v29 = vmul.f32 0.01, %v573_v15  ;;  %vm604_vm11 = vcmp.gt.f32.partialorder %v573_v15, 0.0  ;;  %v651_v57 = vsel %vm603_vm0, %v571_v28, %v627_v35 }
 0x1fe   :  { %v578_v40 = vpop.f32.mrf.mxu1  ;;  %v668_v50 = vpack.c.bf16 %v651_v57, %v649_v47  ;;  %v616_v16 = vmul.f32 0.01, %v543_v60  ;;  %vm588_vm0 = vcmp.gt.f32.partialorder %v533_v61, 0.0  ;;  %v610_v28 = vmul.f32 0.01, %v1321_v17 }
 0x1ff   :  { %v579_v20 = vadd.f32 %v578_v40, %v436_v48  ;;  %v629_v6 = vmul.f32 0.01, %v577_v23  ;;  %vm605_vm13 = vcmp.gt.f32.partialorder %v577_v23, 0.0  ;;  %v652_v48 = vsel %vm604_vm11, %v573_v15, %v628_v29 }
 0x200   :  { %v580_v14 = vpop.f32.mrf.mxu1  ;;  %v669_v59 = vpack.c.bf16 %v652_v48, %v650_v55  ;;  %vm595_vm11 = vcmp.gt.f32.partialorder %v1334_v22, 0.0  ;;  %v644_v15 = vsel %vm596_vm6, %v1336_v13, %v620_v62  ;;  %v537_v40 = vadd.f32 %v1306_v44, %v1314_v4  ;;  %v688_v62 = vpop.permute.xlu0 %687 }
 0x201   :  { %v581_v36 = vadd.f32 %v580_v14, %v441_v41  ;;  %v630_v10 = vmul.f32 0.01, %v579_v20  ;;  %vm606_vm12 = vcmp.gt.f32.partialorder %v579_v20, 0.0  ;;  %v653_v53 = vsel %vm605_vm13, %v577_v23, %v629_v6 }
 0x202   :  { %v582_v30 = vpop.f32.mrf.mxu1  ;;  %v645_v23 = vsel %vm597_vm7, %v1338_v24, %v621_v1  ;;  %vm593_vm13 = vcmp.gt.f32.partialorder %v547_v0, 0.0  ;;  %v642_v14 = vsel %vm594_vm8, %v1332_v21, %v618_v58  ;;  %v615_v13 = vmul.f32 0.01, %v1329_v18 }
 0x203   :  { %vm607_vm10 = vcmp.gt.f32.partialorder %v581_v36, 0.0  ;;  %v631_v31 = vmul.f32 0.01, %v581_v36  ;;  %v583_v32 = vadd.f32 %v582_v30, %v441_v41  ;;  %v654_v42 = vsel %vm606_vm12, %v579_v20, %v630_v10 }
 0x204   :  { %vm592_vm12 = vcmp.gt.f32.partialorder %v543_v60, 0.0  ;;  %v617_v20 = vmul.f32 0.01, %v547_v0  ;;  %v666_v3 = vpack.c.bf16 %v647_v12, %v645_v23  ;;  %v643_v44 = vsel %vm595_vm11, %v1334_v22, %v619_v8  ;;  %v678_v12 = vpop.permute.xlu1 %677 }
 0x205   :  { %vm608_vm14 = vcmp.gt.f32.partialorder %v583_v32, 0.0  ;;  %v632_v33 = vmul.f32 0.01, %v583_v32  ;;  %v655_v38 = vsel %vm607_vm10, %v581_v36, %v631_v31  ;;  %vm784_vm10 = vcmask 1041408  }
 0x206   :  { %v670_v54 = vpack.c.bf16 %v655_v38, %v653_v53  ;;  %v665_v4 = vpack.c.bf16 %v644_v15, %v642_v14  ;;  %v640_v24 = vsel %vm592_vm12, %v543_v60, %v616_v16  ;;  %v1007_v36 = vmov 65535  }
 0x207   :  { %v656_v46 = vsel %vm608_vm14, %v583_v32, %v632_v33  ;;  %vm590_vm14 = vcmp.gt.f32.partialorder %v1327_v19, 0.0  ;;  %v785_v5 = vsel %vm783_vm2, 4294967295, %v1007_v36  ;;  %v527_v21 = vadd.f32 %v1302_v37, %v1316_v39  ;;  %v844_v36 = vld [vmem:[%s1424_s9] sm:$0xf] }
 0x208   :  { %v671_v41 = vpack.c.bf16 %v656_v46, %v654_v42  ;;  %v613_v27 = vmul.f32 0.01, %v537_v40  ;;  %v641_v22 = vsel %vm593_vm13, %v547_v0, %v617_v20  ;;  %vm589_vm1 = vcmp.gt.f32.partialorder %v537_v40, 0.0  ;;  %v980_v46 = vld [vmem:[%s1421_s6] sm:$0xff]  }
 0x209   :  { %v664_v29 = vpack.c.bf16 %v643_v44, %v641_v22  ;;  %v638_v30 = vsel %vm590_vm14, %v1327_v19, %v614_v43  ;;  %v611_v10 = vmul.f32 0.01, %v1324_v63  ;;  %v639_v37 = vsel %vm591_vm15, %v1329_v18, %v615_v13 }
 0x20a   :  { %708 = vmatprep.subr.bf16.mxu0 %v671_v41  ;;  %v663_v39 = vpack.c.bf16 %v640_v24, %v638_v30  ;;  %vm587_vm2 = vcmp.gt.f32.partialorder %v1324_v63, 0.0  ;;  %v636_v31 = vsel %vm588_vm0, %v533_v61, %v612_v25  ;;  %v609_v32 = vmul.f32 0.01, %v527_v21 }
 0x20b   :  { %709 = vmatpush1.bf16.msra.mxu0 %v670_v54  ;;  %v637_v11 = vsel %vm589_vm1, %v537_v40, %v613_v27  ;;  %v775_v6 = vcombine.high %v955_v26, %v955_v26  ;;  %vm585_vm4 = vcmp.gt.f32.partialorder %v527_v21, 0.0  ;;  %v634_v19 = vsel %vm586_vm3, %v1321_v17, %v610_v28  ;;  %v981_v17 = vld [vmem:[%s1421_s6 + $0x8] ss:$0 sps:$4 sm:$0xff]  }
 0x20c   :  { %710 = vmatprep.subr.bf16.mxu0 %v669_v59  ;;  %v662_v9 = vpack.c.bf16 %v639_v37, %v637_v11  ;;  %v786_v33 = vsel %vm784_vm10, %v785_v5, 0  ;;  %v635_v34 = vsel %vm587_vm2, %v1324_v63, %v611_v10  ;;  %v661_v35 = vpack.c.bf16 %v636_v31, %v634_v19  ;;  %v982_v63 = vld [vmem:[%s1423_s8] sm:$0xff]  }
 0x20d   :  { %v633_v18 = vsel %vm585_vm4, %v527_v21, %v609_v32  ;;  %v791_v38 = vand.u32 %v786_v33, %v775_v6  ;;  %v788_v48 = vand.u32 %v955_v26, %v786_v33  ;;  %vm855_vm6 = vcmask 195584  }
 0x20e   :  { %v660_v42 = vpack.c.bf16 %v635_v34, %v633_v18 }
 0x20f   :  { %711 = vmatpush1.bf16.msra.mxu0 %v668_v50 }
 0x210   :  { %712 = vmatprep.subr.bf16.mxu0 %v667_v51 }
 0x213   :  { %713 = vmatpush1.bf16.msra.mxu0 %v666_v3 }
 0x214   :  { %714 = vmatprep.subr.bf16.mxu0 %v665_v4 }
 0x217   :  { %715 = vmatpush1.bf16.msra.mxu0 %v664_v29 }
 0x218   :  { %716 = vmatprep.subr.bf16.mxu0 %v663_v39 }
 0x21b   :  { %717 = vmatpush1.bf16.msra.mxu0 %v662_v9 }
 0x21c   :  { %718 = vmatprep.subr.bf16.mxu0 %v661_v35 }
 0x21f   :  { %719 = vmatpush1.bf16.msra.mxu0 %v660_v42 }
 0x220   :  { %807 = vmatprep.subr.bf16.mxu0 %v791_v38 }
 0x222   :  { %951 = vmatmul.mubr.msk.bf16.vlgmr.msra.gmra.mxu0 %vm473_vm9, %v980_v46 }
 0x223   :  { %746 = vmatprep.mubr.bf16.mxu0 %v1006_v2  ;;  %808 = vmatpush1.bf16.msra.mxu0 %v788_v48 }
 0x22a   :  { %952 = vmatmul.mubr.msk.bf16.gmra.mxu0 %vm473_vm9, %v981_v17  ;;  %vm859_vm9 = vcmask 1043456  }
 0x22b   :  { %825 = vmatprep.mubr.bf16.mxu0 %v1006_v2 }
 0x232   :  { %956 = vmatmul.mubr.msk.bf16.vlgmr.msra.gmra.mxu0 %vm776_vm5, %v982_v63 }
 0x233   :  { %835 = vmatprep.mubr.bf16.mxu0 %v1006_v2  ;;  %v683_v2 = vpop.permute.xlu0 %682 }
 0x23a   :  { %957 = vmatmul.mubr.msk.bf16.gmra.mxu0 %vm776_vm5, %v983_v49 }
 0x2e2   :  { %v738_v53 = vpop.f32.mrf.mxu0 }
 0x2e3   :  { %v739_v14 = vadd.f32 %v738_v53, %v678_v12 }
 0x2e4   :  { %v740_v41 = vpop.f32.mrf.mxu0 }
 0x2e5   :  { %v741_v61 = vadd.f32 %v740_v41, %v678_v12 }
 0x2e6   :  { %v742_v52 = vpop.f32.mrf.mxu0 }
 0x2e7   :  { %v743_v20 = vadd.f32 %v742_v52, %v683_v2 }
 0x2e8   :  { %v744_v54 = vpop.f32.mrf.mxu0 }
 0x2e9   :  { %v745_v50 = vadd.f32 %v744_v54, %v683_v2 }
 0x2ea   :  { %v748_v55 = vpop.f32.mrf.mxu0 }
 0x2eb   :  { %v749_v47 = vadd.f32 %v748_v55, %v688_v62 }
 0x2ec   :  { %v750_v56 = vpop.f32.mrf.mxu0 }
 0x2ed   :  { %v751_v7 = vadd.f32 %v750_v56, %v688_v62 }
 0x2ee   :  { %v752_v57 = vpop.f32.mrf.mxu0 }
 0x2f0   :  { %v753_v59 = vpop.f32.mrf.mxu0 }
 0x2f2   :  { %v827_v60 = vpop.f32.mrf.mxu0 }
 0x2f3   :  { %v845_v24 = vmul.f32 %v827_v60, %v739_v14 }
 0x2f4   :  { %v829_v45 = vpop.f32.mrf.mxu0 }
 0x2f5   :  { %v846_v43 = vmul.f32 %v829_v45, %v741_v61 }
 0x2f6   :  { %v831_v0 = vpop.f32.mrf.mxu0 }
 0x2f7   :  { %v847_v13 = vmul.f32 %v831_v0, %v743_v20 }
 0x2f8   :  { %v833_v1 = vpop.f32.mrf.mxu0 }
 0x2f9   :  { %v848_v16 = vmul.f32 %v833_v1, %v745_v50  ;;  %v851_v26 = vpack.c.bf16 %v847_v13, %v845_v24 }
 0x2fa   :  { %v837_v58 = vpop.f32.mrf.mxu0 }
 0x2fb   :  { %v849_v8 = vmul.f32 %v837_v58, %v749_v47  ;;  %v852_v4 = vpack.c.bf16 %v848_v16, %v846_v43 }
 0x2fc   :  { %v839_v51 = vpop.f32.mrf.mxu0 }
 0x2fd   :  { %v853_v15 = vpack.c.bf16 %v849_v8, %v849_v8  ;;  %v850_v40 = vmul.f32 %v839_v51, %v751_v7 }
 0x2fe   :  { %v841_v23 = vpop.f32.mrf.mxu0 }
 0x2ff   :  { %v854_v3 = vpack.c.bf16 %v850_v40, %v850_v40  ;;  %v861_v25 = vsel %vm859_vm9, %v853_v15, 0 }
 0x300   :  { %v842_v44 = vpop.f32.mrf.mxu0 }
 0x301   :  { %958 = vmatprep.subr.msk.bf16.mxu1 %vm859_vm9, %v854_v3 }
 0x302   :  { %879 = vmatpush1.bf16.msra.mxu1 %v861_v25 }
 0x303   :  { %880 = vmatprep.subr.bf16.mxu1 %v852_v4 }
 0x306   :  { %881 = vmatpush1.bf16.msra.mxu1 %v851_v26 }
 0x309   :  { %959 = vmatmul.mubr.msk.bf16.vlgmr.msra.gmra.mxu1 %vm855_vm6, %v844_v36 }
 0x3c9   :  { %v900_v5 = vpop.f32.mrf.mxu1 }
 0x3ca   :  { %907 = vst [vmem:[#allocation2] sm:$0xff] %v900_v5 }
 0x3cb   :  { %v902_v21 = vpop.f32.mrf.mxu1 }
 0x3cc   :  { %908 = vst [vmem:[#allocation2 + $0x8] sm:$0xff] %v902_v21 }
 0x3cd   :  { %v904_v27 = vpop.f32.mrf.mxu1 }
 0x3ce   :  { %995 = shalt.err (!%p992_p4)
}
 0x3cf   :  { %918 = dma.vmem_to_hbm [thread:$0]  %s916_s13, 256, %s1425_s10, [#allocation3]   ;;  %v905_v22 = vpop.f32.mrf.mxu1 }
 0x3d0   :  { %1004 = dma.done.wait [#allocation3], 256  }
 0x3d1   :  { %1005 = vsyncadd [#allocation3], 4294967040 }
 0x3d2   :  { %922 = vsyncpa [#allocation3], 1 }

</bundles_post_ra>
